<compile_context>
chip_gen: v5e
topology: v5e:2x2
jax: 0.10.0
libtpu: 0.0.40
codegen_flags: <defaults>
</compile_context>

<pallas_src>
import functools

import jax
import jax.numpy as jnp
from jax.experimental import pallas as pl
from jax.experimental.pallas import tpu as pltpu


def _round_up(x, m):
    return ((x + m - 1) // m) * m


def _pad2(a, rows, cols):
    return jnp.pad(a, ((0, rows - a.shape[0]), (0, cols - a.shape[1])))


def bar_encoder_kernel(x_ref,
                       w1_ref, w2_ref, w3_ref,
                       ln_ref, b3_ref,
                       o_ref, *, hidden_dim, eps=1e-5):
    """Fused 3-layer MLP with LayerNorm + ReLU, VMEM resident.

    x_ref          : (tile_m, d_p) bf16 streamed batch tile
    w1/w2/w3_ref   : bf16 resident weights, zero-padded to lane multiples
    ln_ref         : (8, h_p) f32 resident; rows 0..5 = b1, g1, be1, b2, g2, be2
    b3_ref         : (1, l_p) f32 resident final bias

    Padded weight rows/cols, biases and gamma/beta are zero, so padded
    activation columns stay exactly 0 and the LayerNorm statistics (divided by
    the *true* hidden_dim) are unaffected.
    """
    inv_h = 1.0 / float(hidden_dim)

    def ln_relu_bf16(h, gamma, beta):
        # One-pass stats (E[h^2] - mu^2), variance clamped at 0; gamma folded
        # into the rsqrt scale. Affine output + ReLU emitted in bf16 so it
        # feeds the next matmul directly.
        s = jnp.sum(h, axis=-1, keepdims=True)
        sq = jnp.sum(h * h, axis=-1, keepdims=True)
        mu = s * inv_h
        var = jnp.maximum(sq * inv_h - mu * mu, 0.0)
        scale = jax.lax.rsqrt(var + eps) * gamma
        hn = ((h - mu) * scale + beta).astype(jnp.bfloat16)
        return jnp.maximum(hn, 0.0)

    x = x_ref[...]                      # already bf16
    ln = ln_ref[...]                    # (8, h_p) f32
    b1, g1, be1 = ln[0:1, :], ln[1:2, :], ln[2:3, :]
    b2, g2, be2 = ln[3:4, :], ln[4:5, :], ln[5:6, :]

    # Layer 1: Linear -> LayerNorm -> ReLU (bf16 MXU inputs, f32 accum/stats)
    h = jnp.dot(x, w1_ref[...], preferred_element_type=jnp.float32) + b1
    h = ln_relu_bf16(h, g1, be1)

    # Layer 2: Linear -> LayerNorm -> ReLU
    h = jnp.dot(h, w2_ref[...], preferred_element_type=jnp.float32) + b2
    h = ln_relu_bf16(h, g2, be2)

    # Layer 3: final projection into the lane-dense padded latent slab
    y = jnp.dot(h, w3_ref[...], preferred_element_type=jnp.float32) + b3_ref[...]
    o_ref[...] = y.astype(o_ref.dtype)


def _choose_tile_m(batch, d_p, h_p, l_p, tile_vmem_budget, cap=1024):
    """Biggest batch tile (multiple of 8, <= cap) whose live VMEM fits budget."""
    # bytes per batch row held live: double-buffered bf16 x tile,
    # double-buffered f32 out tile, ~3 f32 activation tiles
    per_row = 2 * d_p * 2 + 2 * l_p * 4 + 3 * h_p * 4
    cap = max(8, min(cap, (tile_vmem_budget // max(per_row, 1)) // 8 * 8))
    return min(cap, _round_up(batch, 8))


def bar_encoder_forward(x, params, *, tile_m=None):
    """x: (B, input_dim) float32. params: dict from init_params (f32, true shapes)."""
    B, input_dim = x.shape
    hidden_dim = params["w1"].shape[1]
    latent_dim = params["w3"].shape[1]

    # True (unpadded) param shapes are required: padded-lane correctness of the
    # LayerNorm relies on the wrapper doing the zero padding itself.
    assert params["w1"].shape == (input_dim, hidden_dim)
    assert params["w2"].shape == (hidden_dim, hidden_dim)
    assert params["w3"].shape == (hidden_dim, latent_dim)
    for k in ("b1", "g1", "be1", "b2", "g2", "be2"):
        assert params[k].shape == (1, hidden_dim)
    assert params["b3"].shape == (1, latent_dim)

    f32, bf16 = jnp.float32, jnp.bfloat16

    # Lane-dense padded feature dims (multiples of 128).
    d_p = _round_up(input_dim, 128)
    h_p = _round_up(hidden_dim, 128)
    l_p = _round_up(latent_dim, 128)

    # Weights -> bf16 residents; LN/bias vectors packed into one (8, h_p) f32.
    w1 = _pad2(params["w1"], d_p, h_p).astype(bf16)
    w2 = _pad2(params["w2"], h_p, h_p).astype(bf16)
    w3 = _pad2(params["w3"], h_p, l_p).astype(bf16)
    ln_stack = jnp.concatenate(
        [params["b1"], params["g1"], params["be1"],
         params["b2"], params["g2"], params["be2"]], axis=0)        # (6, hidden)
    ln_pack = _pad2(ln_stack, 8, h_p).astype(f32)                    # (8, h_p)
    b3 = _pad2(params["b3"], 1, l_p).astype(f32)

    param_bytes = (w1.size + w2.size + w3.size) * 2 + (ln_pack.size + b3.size) * 4
    # TODO(synk): add a K-tiled reduction fallback (grid axis marked "arbitrary"
    # + f32 VMEM accumulator) for hidden_dim large enough that whole-array
    # resident weights exceed the per-core VMEM budget (v7x: 64 MiB).
    assert param_bytes < (40 << 20), "resident weights exceed VMEM budget"

    if tile_m is None:
        tile_m = _choose_tile_m(B, d_p, h_p, l_p,
                                tile_vmem_budget=(40 << 20) - param_bytes)
    b_p = _round_up(B, tile_m)
    grid_len = b_p // tile_m

    # Single fused pad+cast pass over x (bf16 halves the streamed HBM bytes).
    xp = jnp.pad(x.astype(bf16), ((0, b_p - B), (0, d_p - input_dim)))

    # Whole-array VMEM residents: single-buffered, brought in once, no re-fetch.
    resident = pl.BlockSpec(memory_space=pltpu.MemorySpace.VMEM)

    grid_spec = pltpu.PrefetchScalarGridSpec(
        num_scalar_prefetch=0,
        grid=(grid_len,),
        in_specs=[
            pl.BlockSpec((tile_m, d_p), lambda i: (i, 0)),   # x tile (pipelined, bf16)
            resident, resident, resident,                     # w1, w2, w3
            resident, resident,                               # ln_pack, b3
        ],
        out_specs=pl.BlockSpec((tile_m, l_p), lambda i: (i, 0)),
    )

    # VMEM budget: single-buffered params + double-buffered bf16 x / f32 out
    # tiles + activation headroom; capped at 56 MiB (headroom under v7x 64 MiB).
    io_bytes = 2 * tile_m * d_p * 2 + 2 * tile_m * l_p * 4
    act_bytes = 4 * tile_m * h_p * 4
    vmem_limit = int(min(max(1.5 * (param_bytes + io_bytes + act_bytes) + (2 << 20),
                             16 << 20), 56 << 20))

    flops = 2 * B * (input_dim * hidden_dim + hidden_dim * hidden_dim
                     + hidden_dim * latent_dim)
    bytes_accessed = int(xp.size * 2 + param_bytes + b_p * l_p * 4)
    cost = pl.CostEstimate(flops=flops, transcendentals=2 * B,
                           bytes_accessed=bytes_accessed)

    out_padded = pl.pallas_call(
        functools.partial(bar_encoder_kernel, hidden_dim=hidden_dim),
        out_shape=jax.ShapeDtypeStruct((b_p, l_p), x.dtype),
        grid_spec=grid_spec,
        compiler_params=pltpu.CompilerParams(
            dimension_semantics=("parallel",),
            vmem_limit_bytes=vmem_limit),
        cost_estimate=cost,
    )(xp, w1, w2, w3, ln_pack, b3)

    return out_padded[:B, :latent_dim]


def init_params(key, input_dim, hidden_dim, latent_dim):
    """PyTorch-style init: U(-1/sqrt(fan_in), 1/sqrt(fan_in)) for Linear weight/bias,
    ones/zeros for LayerNorm affine. Weights stored (in, out), vectors (1, out)."""
    ks = jax.random.split(key, 6)

    def linear(kw, kb, fan_in, fan_out):
        bound = 1.0 / jnp.sqrt(fan_in)
        w = jax.random.uniform(kw, (fan_in, fan_out), jnp.float32, -bound, bound)
        b = jax.random.uniform(kb, (1, fan_out), jnp.float32, -bound, bound)
        return w, b

    w1, b1 = linear(ks[0], ks[1], input_dim, hidden_dim)
    w2, b2 = linear(ks[2], ks[3], hidden_dim, hidden_dim)
    w3, b3 = linear(ks[4], ks[5], hidden_dim, latent_dim)
    ones = jnp.ones((1, hidden_dim), jnp.float32)
    zeros = jnp.zeros((1, hidden_dim), jnp.float32)
    return dict(w1=w1, b1=b1, g1=ones, be1=zeros,
                w2=w2, b2=b2, g2=ones, be2=zeros,
                w3=w3, b3=b3)


def bar_encoder_ref(x, p):
    """Pure-JAX reference matching nn.Sequential semantics (eps=1e-5). x and the
    weights are rounded to bf16 to mirror the kernel's MXU input dtype (a
    deliberate precision trade vs the f32 torch module); math stays f32."""
    def bf(a):
        return a.astype(jnp.bfloat16).astype(jnp.float32)

    def ln(h, g, b, eps=1e-5):
        mu = jnp.mean(h, -1, keepdims=True)
        var = jnp.mean((h - mu) ** 2, -1, keepdims=True)
        return (h - mu) / jnp.sqrt(var + eps) * g + b

    h = jnp.maximum(ln(bf(x) @ bf(p["w1"]) + p["b1"], p["g1"], p["be1"]), 0.0)
    h = jnp.maximum(ln(bf(h) @ bf(p["w2"]) + p["b2"], p["g2"], p["be2"]), 0.0)
    return bf(h) @ bf(p["w3"]) + p["b3"]


if __name__ == "__main__":
    input_dim, hidden_dim, latent_dim = 16, 32, 8
    batch = 50   # not a multiple of 8 -> exercises batch padding

    key = jax.random.PRNGKey(0)
    kx, kp = jax.random.split(key)
    x = jax.random.normal(kx, (batch, input_dim), jnp.float32)
    params = init_params(kp, input_dim, hidden_dim, latent_dim)

    out = jax.block_until_ready(bar_encoder_forward(x, params))
    ref = bar_encoder_ref(x, params)

    assert out.shape == (batch, latent_dim)
    max_err = float(jnp.max(jnp.abs(out - ref)))
    assert jnp.allclose(out, ref, atol=5e-2, rtol=5e-2), \
        f"mismatch: max err {max_err}"

    print("KERNEL_OK")
</pallas_src>

<mosaic_0001>
module attributes {stable_mosaic.version = 11 : i64} {
  func.func @bar_encoder_kernel(%arg0: i32, %arg1: memref<56x128xbf16, #tpu.memory_space<vmem>>, %arg2: memref<128x128xbf16, #tpu.memory_space<vmem>>, %arg3: memref<128x128xbf16, #tpu.memory_space<vmem>>, %arg4: memref<128x128xbf16, #tpu.memory_space<vmem>>, %arg5: memref<8x128xf32, #tpu.memory_space<vmem>>, %arg6: memref<1x128xf32, #tpu.memory_space<vmem>>, %arg7: memref<56x128xf32, #tpu.memory_space<vmem>>) attributes {dimension_semantics = [#tpu.dimension_semantics<parallel>], iteration_bounds = array<i64: 1>, scalar_prefetch = 0 : i64, scratch_operands = 0 : i64, tpu.core_type = #tpu.core_type<tc>, window_params = [{transform_indices = @transform_0, window_bounds = array<i64: 56, 128>}, {pipeline_mode = #tpu.pipeline_mode<synchronous>, transform_indices = @transform_1, window_bounds = array<i64: 128, 128>}, {pipeline_mode = #tpu.pipeline_mode<synchronous>, transform_indices = @transform_2, window_bounds = array<i64: 128, 128>}, {pipeline_mode = #tpu.pipeline_mode<synchronous>, transform_indices = @transform_3, window_bounds = array<i64: 128, 128>}, {pipeline_mode = #tpu.pipeline_mode<synchronous>, transform_indices = @transform_4, window_bounds = array<i64: 8, 128>}, {pipeline_mode = #tpu.pipeline_mode<synchronous>, transform_indices = @transform_5, window_bounds = array<i64: 1, 128>}, {transform_indices = @transform_6, window_bounds = array<i64: 56, 128>}]} {
    %c0 = arith.constant 0 : index
    %c0_0 = arith.constant 0 : index
    %0 = vector.load %arg1[%c0, %c0_0] : memref<56x128xbf16, #tpu.memory_space<vmem>>, vector<56x128xbf16>
    %c0_1 = arith.constant 0 : index
    %c0_2 = arith.constant 0 : index
    %1 = vector.load %arg5[%c0_1, %c0_2] : memref<8x128xf32, #tpu.memory_space<vmem>>, vector<8x128xf32>
    %2 = vector.extract_strided_slice %1 {offsets = [0, 0], sizes = [1, 128], strides = [1, 1]} : vector<8x128xf32> to vector<1x128xf32>
    %3 = vector.extract_strided_slice %1 {offsets = [1, 0], sizes = [1, 128], strides = [1, 1]} : vector<8x128xf32> to vector<1x128xf32>
    %4 = vector.extract_strided_slice %1 {offsets = [2, 0], sizes = [1, 128], strides = [1, 1]} : vector<8x128xf32> to vector<1x128xf32>
    %5 = vector.extract_strided_slice %1 {offsets = [3, 0], sizes = [1, 128], strides = [1, 1]} : vector<8x128xf32> to vector<1x128xf32>
    %6 = vector.extract_strided_slice %1 {offsets = [4, 0], sizes = [1, 128], strides = [1, 1]} : vector<8x128xf32> to vector<1x128xf32>
    %7 = vector.extract_strided_slice %1 {offsets = [5, 0], sizes = [1, 128], strides = [1, 1]} : vector<8x128xf32> to vector<1x128xf32>
    %c0_3 = arith.constant 0 : index
    %c0_4 = arith.constant 0 : index
    %8 = vector.load %arg2[%c0_3, %c0_4] : memref<128x128xbf16, #tpu.memory_space<vmem>>, vector<128x128xbf16>
    %cst = arith.constant dense<0.000000e+00> : vector<56x128xf32>
    %9 = tpu.matmul %0, %8, %cst {dimension_numbers = #tpu.dot_dimension_numbers<[1], [0], [0], [1], [0, 0, 1, 1], [], []>} : vector<56x128xbf16>, vector<128x128xbf16>, vector<56x128xf32> -> vector<56x128xf32>
    %10 = vector.broadcast %2 : vector<1x128xf32> to vector<56x128xf32>
    %11 = arith.addf %9, %10 : vector<56x128xf32>
    %cst_5 = arith.constant dense<0.000000e+00> : vector<56xf32>
    %12 = vector.multi_reduction <add>, %11, %cst_5 [1] : vector<56x128xf32> to vector<56xf32>
    %13 = vector.shape_cast %12 : vector<56xf32> to vector<56x1xf32>
    %14 = arith.mulf %11, %11 : vector<56x128xf32>
    %cst_6 = arith.constant dense<0.000000e+00> : vector<56xf32>
    %15 = vector.multi_reduction <add>, %14, %cst_6 [1] : vector<56x128xf32> to vector<56xf32>
    %16 = vector.shape_cast %15 : vector<56xf32> to vector<56x1xf32>
    %cst_7 = arith.constant 3.125000e-02 : f32
    %17 = vector.broadcast %cst_7 : f32 to vector<56x1xf32>
    %18 = arith.mulf %13, %17 : vector<56x1xf32>
    %cst_8 = arith.constant 3.125000e-02 : f32
    %19 = vector.broadcast %cst_8 : f32 to vector<56x1xf32>
    %20 = arith.mulf %16, %19 : vector<56x1xf32>
    %21 = arith.mulf %18, %18 : vector<56x1xf32>
    %22 = arith.subf %20, %21 : vector<56x1xf32>
    %cst_9 = arith.constant 0.000000e+00 : f32
    %23 = vector.broadcast %cst_9 : f32 to vector<56x1xf32>
    %24 = arith.maximumf %22, %23 : vector<56x1xf32>
    %cst_10 = arith.constant 9.99999974E-6 : f32
    %25 = vector.broadcast %cst_10 : f32 to vector<56x1xf32>
    %26 = arith.addf %24, %25 : vector<56x1xf32>
    %27 = math.rsqrt %26 : vector<56x1xf32>
    %28 = vector.broadcast %27 : vector<56x1xf32> to vector<56x128xf32>
    %29 = vector.broadcast %3 : vector<1x128xf32> to vector<56x128xf32>
    %30 = arith.mulf %28, %29 : vector<56x128xf32>
    %31 = vector.broadcast %18 : vector<56x1xf32> to vector<56x128xf32>
    %32 = arith.subf %11, %31 : vector<56x128xf32>
    %33 = arith.mulf %32, %30 : vector<56x128xf32>
    %34 = vector.broadcast %4 : vector<1x128xf32> to vector<56x128xf32>
    %35 = arith.addf %33, %34 : vector<56x128xf32>
    %36 = arith.truncf %35 : vector<56x128xf32> to vector<56x128xbf16>
    %cst_11 = arith.constant 0.000000e+00 : bf16
    %37 = vector.broadcast %cst_11 : bf16 to vector<56x128xbf16>
    %38 = arith.maximumf %36, %37 : vector<56x128xbf16>
    %c0_12 = arith.constant 0 : index
    %c0_13 = arith.constant 0 : index
    %39 = vector.load %arg3[%c0_12, %c0_13] : memref<128x128xbf16, #tpu.memory_space<vmem>>, vector<128x128xbf16>
    %cst_14 = arith.constant dense<0.000000e+00> : vector<56x128xf32>
    %40 = tpu.matmul %38, %39, %cst_14 {dimension_numbers = #tpu.dot_dimension_numbers<[1], [0], [0], [1], [0, 0, 1, 1], [], []>} : vector<56x128xbf16>, vector<128x128xbf16>, vector<56x128xf32> -> vector<56x128xf32>
    %41 = vector.broadcast %5 : vector<1x128xf32> to vector<56x128xf32>
    %42 = arith.addf %40, %41 : vector<56x128xf32>
    %cst_15 = arith.constant dense<0.000000e+00> : vector<56xf32>
    %43 = vector.multi_reduction <add>, %42, %cst_15 [1] : vector<56x128xf32> to vector<56xf32>
    %44 = vector.shape_cast %43 : vector<56xf32> to vector<56x1xf32>
    %45 = arith.mulf %42, %42 : vector<56x128xf32>
    %cst_16 = arith.constant dense<0.000000e+00> : vector<56xf32>
    %46 = vector.multi_reduction <add>, %45, %cst_16 [1] : vector<56x128xf32> to vector<56xf32>
    %47 = vector.shape_cast %46 : vector<56xf32> to vector<56x1xf32>
    %cst_17 = arith.constant 3.125000e-02 : f32
    %48 = vector.broadcast %cst_17 : f32 to vector<56x1xf32>
    %49 = arith.mulf %44, %48 : vector<56x1xf32>
    %cst_18 = arith.constant 3.125000e-02 : f32
    %50 = vector.broadcast %cst_18 : f32 to vector<56x1xf32>
    %51 = arith.mulf %47, %50 : vector<56x1xf32>
    %52 = arith.mulf %49, %49 : vector<56x1xf32>
    %53 = arith.subf %51, %52 : vector<56x1xf32>
    %cst_19 = arith.constant 0.000000e+00 : f32
    %54 = vector.broadcast %cst_19 : f32 to vector<56x1xf32>
    %55 = arith.maximumf %53, %54 : vector<56x1xf32>
    %cst_20 = arith.constant 9.99999974E-6 : f32
    %56 = vector.broadcast %cst_20 : f32 to vector<56x1xf32>
    %57 = arith.addf %55, %56 : vector<56x1xf32>
    %58 = math.rsqrt %57 : vector<56x1xf32>
    %59 = vector.broadcast %58 : vector<56x1xf32> to vector<56x128xf32>
    %60 = vector.broadcast %6 : vector<1x128xf32> to vector<56x128xf32>
    %61 = arith.mulf %59, %60 : vector<56x128xf32>
    %62 = vector.broadcast %49 : vector<56x1xf32> to vector<56x128xf32>
    %63 = arith.subf %42, %62 : vector<56x128xf32>
    %64 = arith.mulf %63, %61 : vector<56x128xf32>
    %65 = vector.broadcast %7 : vector<1x128xf32> to vector<56x128xf32>
    %66 = arith.addf %64, %65 : vector<56x128xf32>
    %67 = arith.truncf %66 : vector<56x128xf32> to vector<56x128xbf16>
    %cst_21 = arith.constant 0.000000e+00 : bf16
    %68 = vector.broadcast %cst_21 : bf16 to vector<56x128xbf16>
    %69 = arith.maximumf %67, %68 : vector<56x128xbf16>
    %c0_22 = arith.constant 0 : index
    %c0_23 = arith.constant 0 : index
    %70 = vector.load %arg4[%c0_22, %c0_23] : memref<128x128xbf16, #tpu.memory_space<vmem>>, vector<128x128xbf16>
    %cst_24 = arith.constant dense<0.000000e+00> : vector<56x128xf32>
    %71 = tpu.matmul %69, %70, %cst_24 {dimension_numbers = #tpu.dot_dimension_numbers<[1], [0], [0], [1], [0, 0, 1, 1], [], []>} : vector<56x128xbf16>, vector<128x128xbf16>, vector<56x128xf32> -> vector<56x128xf32>
    %c0_25 = arith.constant 0 : index
    %c0_26 = arith.constant 0 : index
    %72 = vector.load %arg6[%c0_25, %c0_26] : memref<1x128xf32, #tpu.memory_space<vmem>>, vector<1x128xf32>
    %73 = vector.broadcast %72 : vector<1x128xf32> to vector<56x128xf32>
    %74 = arith.addf %71, %73 : vector<56x128xf32>
    %c0_27 = arith.constant 0 : index
    %c0_28 = arith.constant 0 : index
    %75 = vector.load %arg7[%c0_27, %c0_28] : memref<56x128xf32, #tpu.memory_space<vmem>>, vector<56x128xf32>
    tpu.vector_store %arg7[%c0_27, %c0_28], %74 {strides = array<i32>} : memref<56x128xf32, #tpu.memory_space<vmem>>, vector<56x128xf32>,
    return
  }
  func.func @transform_0(%arg0: i32) -> (i32, i32) {
    %c0_i32 = arith.constant 0 : i32
    %c0_i32_0 = arith.constant 0 : i32
    return %arg0, %c0_i32 : i32, i32
  }
  func.func @transform_1(%arg0: i32) -> (i32, i32) {
    %c0_i32 = arith.constant 0 : i32
    %c0_i32_0 = arith.constant 0 : i32
    %c0_i32_1 = arith.constant 0 : i32
    return %c0_i32, %c0_i32_0 : i32, i32
  }
  func.func @transform_2(%arg0: i32) -> (i32, i32) {
    %c0_i32 = arith.constant 0 : i32
    %c0_i32_0 = arith.constant 0 : i32
    %c0_i32_1 = arith.constant 0 : i32
    return %c0_i32, %c0_i32_0 : i32, i32
  }
  func.func @transform_3(%arg0: i32) -> (i32, i32) {
    %c0_i32 = arith.constant 0 : i32
    %c0_i32_0 = arith.constant 0 : i32
    %c0_i32_1 = arith.constant 0 : i32
    return %c0_i32, %c0_i32_0 : i32, i32
  }
  func.func @transform_4(%arg0: i32) -> (i32, i32) {
    %c0_i32 = arith.constant 0 : i32
    %c0_i32_0 = arith.constant 0 : i32
    %c0_i32_1 = arith.constant 0 : i32
    return %c0_i32, %c0_i32_0 : i32, i32
  }
  func.func @transform_5(%arg0: i32) -> (i32, i32) {
    %c0_i32 = arith.constant 0 : i32
    %c0_i32_0 = arith.constant 0 : i32
    %c0_i32_1 = arith.constant 0 : i32
    return %c0_i32, %c0_i32_0 : i32, i32
  }
  func.func @transform_6(%arg0: i32) -> (i32, i32) {
    %c0_i32 = arith.constant 0 : i32
    %c0_i32_0 = arith.constant 0 : i32
    return %arg0, %c0_i32 : i32, i32
  }
}

</mosaic_0001>

<bundles_post_ra>
// kernel: tpu_custom_call.1
= control target key start
LH: loop header
LB: loop body
LE: loop exit
PB: predicated region body
PF: predicated region fallthrough
CT: control target
= control target key end

     0   :  { %11 = vsyncpa [#allocation3], 0  ;;  %s1464_s0 = inlined_call_operand.hbm [shape: bf16[56,128], index: 0, kind: input, shape index: {}]   ;;  %s1465_s1 = inlined_call_operand.hbm [shape: bf16[128,128], index: 1, kind: input, shape index: {}]   ;;  %s1466_s2 = inlined_call_operand.hbm [shape: bf16[128,128], index: 2, kind: input, shape index: {}]   ;;  %s1467_s3 = inlined_call_operand.hbm [shape: bf16[128,128], index: 3, kind: input, shape index: {}]   ;;  %s1468_s4 = inlined_call_operand.hbm [shape: f32[8,128], index: 4, kind: input, shape index: {}]   ;;  %s1469_s5 = inlined_call_operand.vmem [shape: f32[1,128], index: 5, kind: input, shape index: {}]   ;;  %s1470_s6 = inlined_call_operand.hbm [shape: f32[56,128], index: 6, kind: output, shape index: {}]  }
   0x1   :  { %12 = vsyncpa [#allocation6], 0 }
   0x2   :  { %13 = vsyncpa [#allocation9], 0 }
   0x3   :  { %14 = vsyncpa [#allocation4], 0  ;;  %s32_s23 = sshll.u32 %s1465_s1, 4  ;;  %s1178_s24 = smov [#allocation5]   ;;  %s33_s23 = int_to_ptr.hbm [resolvable:$true] %s32_s23 }
   0x4   :  { %s34_s25 = sshll.u32 %s1178_s24, 4  ;;  %s58_s28 = sshll.u32 %s1467_s3, 4  ;;  %s35_s25 = int_to_ptr.vmem [resolvable:$true] %s34_s25  ;;  %s59_s28 = int_to_ptr.hbm [resolvable:$true] %s58_s28 }
   0x5   :  { %s1179_s29 = smov 64   ;;  %s1180_s30 = smov 4  }
   0x6   :  { %40 = dma.hbm_to_vmem [thread:$0]  %s33_s23, 1024, %s35_s25, [#allocation6], %s1179_s29, %s1179_s29, %s1180_s30  }
   0x7   :  { %s1181_s7 = smov [#allocation8]   ;;  %s19_s11 = sshll.u32 %s1464_s0, 4  ;;  %s20_s11 = int_to_ptr.hbm [resolvable:$true] %s19_s11 }
   0x8   :  { %s60_s8 = sshll.u32 %s1181_s7, 4  ;;  %s45_s13 = sshll.u32 %s1466_s2, 4  ;;  %s61_s8 = int_to_ptr.vmem [resolvable:$true] %s60_s8  ;;  %s46_s13 = int_to_ptr.hbm [resolvable:$true] %s45_s13 }
   0x9   :  { %66 = dma.hbm_to_vmem [thread:$0]  %s59_s28, 1024, %s61_s8, [#allocation9], %s1179_s29, %s1179_s29, %s1180_s30  }
   0xa   :  { %s1182_s14 = smov [#allocation2]   ;;  %s1183_s3 = smov [#allocation7]  }
   0xb   :  { %s21_s15 = sshll.u32 %s1182_s14, 4  ;;  %s47_s16 = sshll.u32 %s1183_s3, 4  ;;  %s22_s15 = int_to_ptr.vmem [resolvable:$true] %s21_s15  ;;  %s48_s16 = int_to_ptr.vmem [resolvable:$true] %s47_s16 }
   0xc   :  { %27 = dma.hbm_to_vmem [thread:$0]  %s20_s11, 448, %s22_s15, [#allocation3], %s1179_s29, %s1179_s29, %s1180_s30  }
   0xd   :  { %s72_s19 = sshll.u32 %s1468_s4, 4  ;;  %s1184_s0 = smov [#allocation10]   ;;  %s73_s19 = int_to_ptr.hbm [resolvable:$true] %s72_s19 }
   0xe   :  { %53 = dma.hbm_to_vmem [thread:$0]  %s46_s13, 1024, %s48_s16, [#allocation6], %s1179_s29, %s1179_s29, %s1180_s30  }
   0xf   :  { %s74_s20 = sshll.u32 %s1184_s0, 4  ;;  %s75_s20 = int_to_ptr.vmem [resolvable:$true] %s74_s20 }
  0x10   :  { %77 = dma.hbm_to_vmem [thread:$0]  %s73_s19, 128, %s75_s20, [#allocation9]  }
  0x11   :  { %1170 = dma.done.wait [#allocation3], 448  }
  0x12   :  { %1171 = vsyncadd [#allocation3], 4294966848 }
  0x13   :  { %1172 = dma.done.wait [#allocation6], 2048  }
  0x14   :  { %1173 = vsyncadd [#allocation6], 4294965248 }
  0x15   :  { %1174 = dma.done.wait [#allocation9], 1152  }
  0x16   :  { %1175 = vsyncadd [#allocation9], 4294966144  ;;  %v962_v0 = vld [vmem:[#allocation5 + $0x38] sm:$0xff]  ;;  %v961_v1 = vld [vmem:[#allocation5 + $0x30] sm:$0xff]  ;;  %s1185_s21 = smov [#allocation11]   ;;  %s829_s24 = sshll.u32 %s1470_s6, 4  ;;  %s830_s24 = int_to_ptr.hbm [resolvable:$true] %s829_s24 }
  0x17   :  { %195 = vmatpush.bf16.msra.mxu0 %v962_v0  ;;  %979 = vmatpush.bf16.msra.mxu3 %v962_v0  ;;  %v960_v2 = vld [vmem:[#allocation5 + $0x28] sm:$0xff]  ;;  %v959_v3 = vld [vmem:[#allocation5 + $0x20] sm:$0xff]  ;;  %v958_v4 = vld [vmem:[#allocation5 + $0x18] sm:$0xff]  ;;  %s1186_s25 = smov 128   ;;  %s1187_s26 = smov 8  }
  0x18   :  { %v957_v5 = vld [vmem:[#allocation5 + $0x10] sm:$0xff]  ;;  %v956_v6 = vld [vmem:[#allocation5 + $0x8] sm:$0xff]  ;;  %v955_v7 = vld [vmem:[#allocation5] sm:$0xff] }
  0x19   :  { %v952_v8 = vld [vmem:[#allocation2] sm:$0xff]  ;;  %v953_v9 = vld [vmem:[#allocation2 + $0x8] sm:$0xff]  ;;  %v954_v10 = vld [vmem:[#allocation2 + $0x10] sm:$0xff] }
  0x1a   :  { %v106_v11 = vld [vmem:[#allocation2 + $0x18] sm:$0xf]  ;;  %v1238_v14 = vld [vmem:[#allocation10] sm:$0xff]  ;;  %v969_v39 = vld [vmem:[#allocation7 + $0x30] sm:$0xff] }
  0x1b   :  { %196 = vmatpush.bf16.msra.mxu0 %v961_v1  ;;  %980 = vmatpush.bf16.msra.mxu3 %v961_v1  ;;  %v138_v12 = vunpack.c.l.b16 %v106_v11  ;;  %v124_v15 = vperm.slane %v1238_v14, 0  ;;  %v970_v38 = vld [vmem:[#allocation7 + $0x38] sm:$0xff]  ;;  %v968_v40 = vld [vmem:[#allocation7 + $0x28] sm:$0xff]  ;;  %v967_v41 = vld [vmem:[#allocation7 + $0x20] sm:$0xff] }
  0x1c   :  { %490 = vmatpush.bf16.msra.mxu1 %v970_v38  ;;  %v966_v42 = vld [vmem:[#allocation7 + $0x18] sm:$0xff]  ;;  %v965_v48 = vld [vmem:[#allocation7 + $0x10] sm:$0xff]  ;;  %v964_v52 = vld [vmem:[#allocation7 + $0x8] sm:$0xff] }
  0x1d   :  { %v142_v13 = vpack.c.b16 %v138_v12, %v138_v12  ;;  %v963_v58 = vld [vmem:[#allocation7] sm:$0xff] }
  0x1f   :  { %197 = vmatpush.bf16.msra.mxu0 %v960_v2  ;;  %981 = vmatpush.bf16.msra.mxu3 %v960_v2 }
  0x20   :  { %491 = vmatpush.bf16.msra.mxu1 %v969_v39 }
  0x23   :  { %198 = vmatpush.bf16.msra.mxu0 %v959_v3  ;;  %982 = vmatpush.bf16.msra.mxu3 %v959_v3 }
  0x24   :  { %492 = vmatpush.bf16.msra.mxu1 %v968_v40 }
  0x27   :  { %199 = vmatpush.bf16.msra.mxu0 %v958_v4  ;;  %983 = vmatpush.bf16.msra.mxu3 %v958_v4 }
  0x28   :  { %493 = vmatpush.bf16.msra.mxu1 %v967_v41 }
  0x2b   :  { %200 = vmatpush.bf16.msra.mxu0 %v957_v5  ;;  %984 = vmatpush.bf16.msra.mxu3 %v957_v5 }
  0x2c   :  { %494 = vmatpush.bf16.msra.mxu1 %v966_v42 }
  0x2f   :  { %201 = vmatpush.bf16.msra.mxu0 %v956_v6  ;;  %985 = vmatpush.bf16.msra.mxu3 %v956_v6 }
  0x30   :  { %495 = vmatpush.bf16.msra.mxu1 %v965_v48 }
  0x33   :  { %202 = vmatpush.bf16.msra.mxu0 %v955_v7  ;;  %986 = vmatpush.bf16.msra.mxu3 %v955_v7 }
  0x34   :  { %496 = vmatpush.bf16.msra.mxu1 %v964_v52 }
  0x36   :  { %203 = vmatmul.bf16.vlgmr.msra.gmra.mxu0 %v952_v8  ;;  %208 = vmatmul.bf16.vlgmr.msra.gmra.mxu3 %v953_v9 }
  0x38   :  { %497 = vmatpush.bf16.msra.mxu1 %v963_v58 }
  0x46   :  { %213 = vmatmul.bf16.gmra.mxu3 %v954_v10 }
  0x56   :  { %218 = vmatmul.bf16.gmra.mxu3 %v142_v13 }
  0xb3   :  { %v204_v16 = vpop.f32.mrf.mxu0 }
  0xb4   :  { %v1241_v17 = vadd.f32 %v204_v16, %v124_v15 }
  0xb6   :  { %223 = vadd.xlane.f32.xlu0 %v1241_v17  ;;  %v237_v18 = vmul.f32 %v1241_v17, %v1241_v17 }
  0xb8   :  { %244 = vadd.xlane.f32.xlu1 %v237_v18 }
  0xb9   :  { %v209_v19 = vpop.f32.mrf.mxu3 }
  0xba   :  { %v1246_v20 = vadd.f32 %v209_v19, %v124_v15 }
  0xbb   :  { %v206_v21 = vpop.f32.mrf.mxu0 }
  0xbc   :  { %v1248_v22 = vadd.f32 %v206_v21, %v124_v15  ;;  %227 = vadd.xlane.f32.xlu2 %v1246_v20  ;;  %v239_v26 = vmul.f32 %v1246_v20, %v1246_v20 }
  0xbe   :  { %225 = vadd.xlane.f32.xlu0 %v1248_v22  ;;  %v238_v23 = vmul.f32 %v1248_v22, %v1248_v22 }
  0xc0   :  { %246 = vadd.xlane.f32.xlu1 %v238_v23 }
  0xc1   :  { %v211_v24 = vpop.f32.mrf.mxu3 }
  0xc2   :  { %v1254_v25 = vadd.f32 %v211_v24, %v124_v15 }
  0xc4   :  { %229 = vadd.xlane.f32.xlu2 %v1254_v25  ;;  %v240_v27 = vmul.f32 %v1254_v25, %v1254_v25 }
  0xc6   :  { %248 = vadd.xlane.f32.xlu0 %v239_v26 }
  0xc8   :  { %250 = vadd.xlane.f32.xlu1 %v240_v27 }
  0xc9   :  { %v214_v28 = vpop.f32.mrf.mxu3 }
  0xca   :  { %v1261_v29 = vadd.f32 %v214_v28, %v124_v15 }
  0xcc   :  { %231 = vadd.xlane.f32.xlu2 %v1261_v29  ;;  %v241_v30 = vmul.f32 %v1261_v29, %v1261_v29 }
  0xd0   :  { %252 = vadd.xlane.f32.xlu1 %v241_v30 }
  0xd1   :  { %v216_v31 = vpop.f32.mrf.mxu3 }
  0xd2   :  { %v1266_v32 = vadd.f32 %v216_v31, %v124_v15 }
  0xd4   :  { %233 = vadd.xlane.f32.xlu0 %v1266_v32  ;;  %v242_v33 = vmul.f32 %v1266_v32, %v1266_v32 }
  0xd6   :  { %254 = vadd.xlane.f32.xlu2 %v242_v33 }
  0xd9   :  { %v219_v34 = vpop.f32.mrf.mxu3 }
  0xda   :  { %v1271_v35 = vadd.f32 %v219_v34, %v124_v15  ;;  %v1303_v34 = vperm.slane %v1238_v14, 1 }
  0xdc   :  { %235 = vadd.xlane.f32.xlu0 %v1271_v35  ;;  %v243_v36 = vmul.f32 %v1271_v35, %v1271_v35 }
  0xde   :  { %256 = vadd.xlane.f32.xlu1 %v243_v36 }
  0xe1   :  { %v221_v37 = vpop.f32.mrf.mxu3 }
 0x129   :  { %v224_v43 = vpop.xlane.xlu0 %223 }
 0x12a   :  { %v1276_v44 = vmul.f32 0.03125, %v224_v43 }
 0x12b   :  { %v245_v45 = vpop.xlane.xlu1 %244 }
 0x12c   :  { %v272_v46 = vmul.f32 %v1276_v44, %v1276_v44  ;;  %v265_v47 = vmul.f32 0.03125, %v245_v45  ;;  %v378_v52 = vsub.f32 %v1241_v17, %v1276_v44 }
 0x12e   :  { %v279_v49 = vsub.f32 %v265_v47, %v272_v46 }
 0x12f   :  { %v228_v50 = vpop.xlane.xlu2 %227 }
 0x130   :  { %v286_v51 = vmax.f32 %v279_v49, 0.0  ;;  %v1284_v60 = vmul.f32 0.03125, %v228_v50 }
 0x131   :  { %v226_v53 = vpop.xlane.xlu0 %225 }
 0x132   :  { %v293_v54 = vadd.f32 1e-05, %v286_v51  ;;  %v1280_v55 = vmul.f32 0.03125, %v226_v53  ;;  %v274_v63 = vmul.f32 %v1284_v60, %v1284_v60 }
 0x133   :  { %v247_v56 = vpop.xlane.xlu1 %246 }
 0x134   :  { %998 = vrsqrt.f32 %v293_v54  ;;  %v273_v57 = vmul.f32 %v1280_v55, %v1280_v55  ;;  %v266_v59 = vmul.f32 0.03125, %v247_v56  ;;  %vm306_vm1 = vweird.f32 %v293_v54 }
 0x135   :  { %v379_v44 = vsub.f32 %v1248_v22, %v1280_v55 }
 0x136   :  { %v280_v61 = vsub.f32 %v266_v59, %v273_v57  ;;  %v1321_v59 = vperm.slane %v1238_v14, 2 }
 0x137   :  { %v230_v62 = vpop.xlane.xlu2 %229 }
 0x138   :  { %v1288_v0 = vmul.f32 0.03125, %v230_v62  ;;  %v287_v1 = vmax.f32 %v280_v61, 0.0 }
 0x139   :  { %v249_v2 = vpop.xlane.xlu0 %248 }
 0x13a   :  { %v999_v3 = vpop.eup %998  ;;  %v275_v4 = vmul.f32 %v1288_v0, %v1288_v0  ;;  %v267_v5 = vmul.f32 0.03125, %v249_v2  ;;  %v294_v7 = vadd.f32 1e-05, %v287_v1 }
 0x13b   :  { %v301_v6 = vmul.f32 %v999_v3, %v293_v54  ;;  %v251_v8 = vpop.xlane.xlu1 %250  ;;  %vm307_vm0 = vweird.f32 %v999_v3 }
 0x13c   :  { %v281_v9 = vsub.f32 %v267_v5, %v274_v63  ;;  %v268_v10 = vmul.f32 0.03125, %v251_v8  ;;  %1000 = vrsqrt.f32 %v294_v7  ;;  %vm308_vm2 = vmor %vm306_vm1, %vm307_vm0  ;;  %vm316_vm4 = vweird.f32 %v294_v7 }
 0x13d   :  { %v302_v11 = vmul.f32 %v999_v3, %v301_v6 }
 0x13e   :  { %v288_v12 = vmax.f32 %v281_v9, 0.0  ;;  %v282_v13 = vsub.f32 %v268_v10, %v275_v4 }
 0x13f   :  { %v303_v15 = vmul.f32 0.5, %v302_v11  ;;  %v232_v16 = vpop.xlane.xlu2 %231 }
 0x140   :  { %v1292_v18 = vadd.f32 1e-05, %v288_v12  ;;  %v289_v19 = vmax.f32 %v282_v13, 0.0  ;;  %v1294_v23 = vmul.f32 0.03125, %v232_v16 }
 0x141   :  { %v304_v21 = vsub.f32 1.5, %v303_v15 }
 0x142   :  { %1002 = vrsqrt.f32 %v1292_v18  ;;  %v1297_v24 = vadd.f32 1e-05, %v289_v19  ;;  %v1001_v26 = vpop.eup %1000  ;;  %v276_v28 = vmul.f32 %v1294_v23, %v1294_v23  ;;  %vm326_vm9 = vweird.f32 %v1292_v18 }
 0x143   :  { %v305_v27 = vmul.f32 %v999_v3, %v304_v21  ;;  %v253_v30 = vpop.xlane.xlu1 %252  ;;  %v311_v31 = vmul.f32 %v1001_v26, %v294_v7  ;;  %vm317_vm3 = vweird.f32 %v1001_v26 }
 0x144   :  { %1004 = vrsqrt.f32 %v1297_v24  ;;  %v269_v33 = vmul.f32 0.03125, %v253_v30  ;;  %vm318_vm5 = vmor %vm316_vm4, %vm317_vm3  ;;  %vm336_vm8 = vweird.f32 %v1297_v24 }
 0x145   :  { %v312_v36 = vmul.f32 %v1001_v26, %v311_v31  ;;  %v309_v37 = vsel %vm308_vm2, %v999_v3, %v305_v27 }
 0x146   :  { %v283_v38 = vsub.f32 %v269_v33, %v276_v28  ;;  %v371_v47 = vmul.f32 %v1303_v34, %v309_v37 }
 0x147   :  { %v234_v39 = vpop.xlane.xlu0 %233  ;;  %v313_v41 = vmul.f32 0.5, %v312_v36 }
 0x148   :  { %v1305_v40 = vpop.eup %1002  ;;  %v1307_v42 = vmul.f32 0.03125, %v234_v39  ;;  %v290_v45 = vmax.f32 %v283_v38, 0.0  ;;  %v385_v63 = vmul.f32 %v378_v52, %v371_v47  ;;  %v381_v38 = vsub.f32 %v1254_v25, %v1288_v0 }
 0x149   :  { %v321_v43 = vmul.f32 %v1305_v40, %v1292_v18  ;;  %v255_v46 = vpop.xlane.xlu2 %254  ;;  %v314_v49 = vsub.f32 1.5, %v313_v41  ;;  %vm327_vm7 = vweird.f32 %v1305_v40 }
 0x14a   :  { %v1005_v48 = vpop.eup %1004  ;;  %v277_v50 = vmul.f32 %v1307_v42, %v1307_v42  ;;  %v270_v51 = vmul.f32 0.03125, %v255_v46  ;;  %v1318_v56 = vadd.f32 1e-05, %v290_v45  ;;  %v393_v11 = vadd.f32 %v1321_v59, %v385_v63  ;;  %vm328_vm11 = vmor %vm326_vm9, %vm327_vm7 }
 0x14b   :  { %v322_v53 = vmul.f32 %v1305_v40, %v321_v43  ;;  %v331_v54 = vmul.f32 %v1005_v48, %v1297_v24  ;;  %v315_v57 = vmul.f32 %v1001_v26, %v314_v49  ;;  %vm337_vm6 = vweird.f32 %v1005_v48 }
 0x14c   :  { %v284_v58 = vsub.f32 %v270_v51, %v277_v50  ;;  %1006 = vrsqrt.f32 %v1318_v56  ;;  %vm338_vm10 = vmor %vm336_vm8, %vm337_vm6  ;;  %v380_v45 = vsub.f32 %v1246_v20, %v1284_v60  ;;  %vm346_vm13 = vweird.f32 %v1318_v56 }
 0x14d   :  { %v323_v61 = vmul.f32 0.5, %v322_v53  ;;  %v332_v62 = vmul.f32 %v1005_v48, %v331_v54  ;;  %v319_v17 = vsel %vm318_vm5, %v1001_v26, %v315_v57  ;;  %v414_v26 = vmax.f32 %v393_v11, 0.0 }
 0x14e   :  { %v291_v1 = vmax.f32 %v284_v58, 0.0  ;;  %v372_v5 = vmul.f32 %v1303_v34, %v319_v17 }
 0x14f   :  { %v324_v2 = vsub.f32 1.5, %v323_v61  ;;  %v333_v3 = vmul.f32 0.5, %v332_v62  ;;  %v236_v4 = vpop.xlane.xlu0 %235 }
 0x150   :  { %v298_v6 = vadd.f32 1e-05, %v291_v1  ;;  %v1327_v7 = vmul.f32 0.03125, %v236_v4  ;;  %v386_v10 = vmul.f32 %v379_v44, %v372_v5  ;;  %v382_v44 = vsub.f32 %v1261_v29, %v1294_v23 }
 0x151   :  { %v334_v8 = vsub.f32 1.5, %v333_v3  ;;  %v257_v9 = vpop.xlane.xlu1 %256  ;;  %v325_v12 = vmul.f32 %v1305_v40, %v324_v2 }
 0x152   :  { %1008 = vrsqrt.f32 %v298_v6  ;;  %v278_v22 = vmul.f32 %v1327_v7, %v1327_v7  ;;  %v1007_v55 = vpop.eup %1006  ;;  %v271_v15 = vmul.f32 0.03125, %v257_v9  ;;  %v394_v16 = vadd.f32 %v1321_v59, %v386_v10 }
 0x153   :  { %v335_v13 = vmul.f32 %v1005_v48, %v334_v8  ;;  %v341_v19 = vmul.f32 %v1007_v55, %v1318_v56  ;;  %v329_v31 = vsel %vm328_vm11, %v1305_v40, %v325_v12  ;;  %vm347_vm14 = vweird.f32 %v1007_v55 }
 0x154   :  { %v285_v21 = vsub.f32 %v271_v15, %v278_v22  ;;  %v415_v27 = vmax.f32 %v394_v16, 0.0  ;;  %v373_v41 = vmul.f32 %v1303_v34, %v329_v31  ;;  %vm356_vm15 = vweird.f32 %v298_v6  ;;  %vm348_vm1 = vmor %vm346_vm13, %vm347_vm14 }
 0x155   :  { %v339_v28 = vsel %vm338_vm10, %v1005_v48, %v335_v13  ;;  %v342_v30 = vmul.f32 %v1007_v55, %v341_v19  ;;  %v383_v56 = vsub.f32 %v1266_v32, %v1307_v42  ;;  %v384_v29 = vsub.f32 %v1271_v35, %v1327_v7 }
 0x156   :  { %v292_v33 = vmax.f32 %v285_v21, 0.0  ;;  %v421_v36 = vpack.c.bf16 %v415_v27, %v414_v26  ;;  %v374_v24 = vmul.f32 %v1303_v34, %v339_v28  ;;  %v387_v48 = vmul.f32 %v380_v45, %v373_v41  ;;  %v978_v45 = vld [vmem:[#allocation8 + $0x38] sm:$0xff] }
 0x157   :  { %v343_v43 = vmul.f32 0.5, %v342_v30  ;;  %v441_v13 = vperm.slane %v1238_v14, 3  ;;  %788 = vmatpush.bf16.msra.mxu2 %v978_v45 }
 0x158   :  { %v1009_v37 = vpop.eup %1008  ;;  %v299_v39 = vadd.f32 1e-05, %v292_v33  ;;  %498 = vmatmul.bf16.vlgmr.msra.gmra.mxu1 %v421_v36  ;;  %v388_v40 = vmul.f32 %v381_v38, %v374_v24  ;;  %v395_v52 = vadd.f32 %v1321_v59, %v387_v48  ;;  %v974_v48 = vld [vmem:[#allocation8 + $0x18] sm:$0xff] }
 0x159   :  { %v351_v18 = vmul.f32 %v1009_v37, %v298_v6  ;;  %v344_v49 = vsub.f32 1.5, %v343_v43  ;;  %vm357_vm12 = vweird.f32 %v1009_v37 }
 0x15a   :  { %1010 = vrsqrt.f32 %v299_v39  ;;  %v396_v51 = vadd.f32 %v1321_v59, %v388_v40  ;;  %vm358_vm0 = vmor %vm356_vm15, %vm357_vm12  ;;  %v416_v58 = vmax.f32 %v395_v52, 0.0  ;;  %vm366_vm2 = vweird.f32 %v299_v39  ;;  %v976_v40 = vld [vmem:[#allocation8 + $0x28] sm:$0xff]  ;;  %v973_v52 = vld [vmem:[#allocation8 + $0x10] sm:$0xff] }
 0x15b   :  { %v352_v46 = vmul.f32 %v1009_v37, %v351_v18  ;;  %v345_v53 = vmul.f32 %v1007_v55, %v344_v49 }
 0x15c   :  { %v417_v60 = vmax.f32 %v396_v51, 0.0 }
 0x15d   :  { %v353_v47 = vmul.f32 0.5, %v352_v46  ;;  %v349_v61 = vsel %vm348_vm1, %v1007_v55, %v345_v53  ;;  %v977_v46 = vld [vmem:[#allocation8 + $0x30] sm:$0xff] }
 0x15e   :  { %v422_v62 = vpack.c.bf16 %v417_v60, %v416_v58  ;;  %v375_v17 = vmul.f32 %v1303_v34, %v349_v61  ;;  %789 = vmatpush.bf16.msra.mxu2 %v977_v46  ;;  %v972_v60 = vld [vmem:[#allocation8 + $0x8] sm:$0xff] }
 0x15f   :  { %v354_v50 = vsub.f32 1.5, %v353_v47  ;;  %v975_v47 = vld [vmem:[#allocation8 + $0x20] sm:$0xff] }
 0x160   :  { %v1011_v25 = vpop.eup %1010  ;;  %v389_v4 = vmul.f32 %v382_v44, %v375_v17 }
 0x161   :  { %v355_v0 = vmul.f32 %v1009_v37, %v354_v50  ;;  %v361_v20 = vmul.f32 %v1011_v25, %v299_v39  ;;  %vm367_vm3 = vweird.f32 %v1011_v25 }
 0x162   :  { %vm368_vm4 = vmor %vm366_vm2, %vm367_vm3  ;;  %v397_v8 = vadd.f32 %v1321_v59, %v389_v4  ;;  %790 = vmatpush.bf16.msra.mxu2 %v976_v40 }
 0x163   :  { %v362_v54 = vmul.f32 %v1011_v25, %v361_v20  ;;  %v359_v57 = vsel %vm358_vm0, %v1009_v37, %v355_v0 }
 0x164   :  { %v376_v63 = vmul.f32 %v1303_v34, %v359_v57  ;;  %v418_v32 = vmax.f32 %v397_v8, 0.0 }
 0x165   :  { %v363_v1 = vmul.f32 0.5, %v362_v54 }
 0x166   :  { %v390_v2 = vmul.f32 %v383_v56, %v376_v63  ;;  %791 = vmatpush.bf16.msra.mxu2 %v975_v47  ;;  %v971_v63 = vld [vmem:[#allocation8] sm:$0xff] }
 0x167   :  { %v364_v3 = vsub.f32 1.5, %v363_v1 }
 0x168   :  { %503 = vmatmul.bf16.gmra.mxu1 %v422_v62  ;;  %v398_v5 = vadd.f32 %v1321_v59, %v390_v2 }
 0x169   :  { %v365_v6 = vmul.f32 %v1011_v25, %v364_v3 }
 0x16a   :  { %v419_v9 = vmax.f32 %v398_v5, 0.0  ;;  %792 = vmatpush.bf16.msra.mxu2 %v974_v48 }
 0x16b   :  { %v369_v10 = vsel %vm368_vm4, %v1011_v25, %v365_v6 }
 0x16c   :  { %v423_v42 = vpack.c.bf16 %v419_v9, %v418_v32  ;;  %v377_v11 = vmul.f32 %v1303_v34, %v369_v10 }
 0x16e   :  { %v391_v23 = vmul.f32 %v384_v29, %v377_v11  ;;  %793 = vmatpush.bf16.msra.mxu2 %v973_v52  ;;  %v1423_v52 = vperm.slane %v1238_v14, 5 }
 0x170   :  { %v399_v12 = vadd.f32 %v1321_v59, %v391_v23 }
 0x172   :  { %v420_v22 = vmax.f32 %v399_v12, 0.0  ;;  %794 = vmatpush.bf16.msra.mxu2 %v972_v60 }
 0x174   :  { %v424_v55 = vpack.c.bf16 %v420_v22, %v420_v22 }
 0x176   :  { %795 = vmatpush.bf16.msra.mxu2 %v971_v63 }
 0x178   :  { %508 = vmatmul.bf16.gmra.mxu1 %v423_v42 }
 0x188   :  { %513 = vmatmul.bf16.gmra.mxu1 %v424_v55 }
 0x1d5   :  { %v499_v15 = vpop.f32.mrf.mxu1 }
 0x1d6   :  { %v1361_v16 = vadd.f32 %v499_v15, %v441_v13 }
 0x1d8   :  { %518 = vadd.xlane.f32.xlu2 %v1361_v16  ;;  %v532_v34 = vmul.f32 %v1361_v16, %v1361_v16 }
 0x1da   :  { %539 = vadd.xlane.f32.xlu1 %v532_v34 }
 0x1dd   :  { %v501_v19 = vpop.f32.mrf.mxu1 }
 0x1de   :  { %v1366_v35 = vadd.f32 %v501_v19, %v441_v13 }
 0x1e0   :  { %520 = vadd.xlane.f32.xlu0 %v1366_v35  ;;  %v533_v59 = vmul.f32 %v1366_v35, %v1366_v35 }
 0x1e2   :  { %541 = vadd.xlane.f32.xlu2 %v533_v59 }
 0x1e5   :  { %v504_v7 = vpop.f32.mrf.mxu1 }
 0x1e6   :  { %v1371_v21 = vadd.f32 %v504_v7, %v441_v13  ;;  %v1413_v7 = vperm.slane %v1238_v14, 4 }
 0x1e8   :  { %522 = vadd.xlane.f32.xlu0 %v1371_v21  ;;  %v534_v26 = vmul.f32 %v1371_v21, %v1371_v21 }
 0x1ea   :  { %543 = vadd.xlane.f32.xlu2 %v534_v26 }
 0x1ed   :  { %v506_v27 = vpop.f32.mrf.mxu1 }
 0x1ee   :  { %v1376_v28 = vadd.f32 %v506_v27, %v441_v13 }
 0x1f0   :  { %524 = vadd.xlane.f32.xlu1 %v1376_v28  ;;  %v535_v30 = vmul.f32 %v1376_v28, %v1376_v28 }
 0x1f2   :  { %545 = vadd.xlane.f32.xlu0 %v535_v30 }
 0x1f5   :  { %v509_v31 = vpop.f32.mrf.mxu1 }
 0x1f6   :  { %v1381_v33 = vadd.f32 %v509_v31, %v441_v13 }
 0x1f8   :  { %526 = vadd.xlane.f32.xlu1 %v1381_v33  ;;  %v536_v36 = vmul.f32 %v1381_v33, %v1381_v33 }
 0x1fa   :  { %547 = vadd.xlane.f32.xlu0 %v536_v36 }
 0x1fd   :  { %v511_v24 = vpop.f32.mrf.mxu1 }
 0x1fe   :  { %v1386_v37 = vadd.f32 %v511_v24, %v441_v13 }
 0x200   :  { %528 = vadd.xlane.f32.xlu2 %v1386_v37  ;;  %v537_v38 = vmul.f32 %v1386_v37, %v1386_v37 }
 0x202   :  { %549 = vadd.xlane.f32.xlu1 %v537_v38 }
 0x205   :  { %v514_v18 = vpop.f32.mrf.mxu1 }
 0x206   :  { %v1391_v39 = vadd.f32 %v514_v18, %v441_v13 }
 0x208   :  { %530 = vadd.xlane.f32.xlu2 %v1391_v39  ;;  %v538_v41 = vmul.f32 %v1391_v39, %v1391_v39 }
 0x20a   :  { %551 = vadd.xlane.f32.xlu0 %v538_v41 }
 0x20d   :  { %v516_v43 = vpop.f32.mrf.mxu1 }
 0x24b   :  { %v519_v49 = vpop.xlane.xlu2 %518 }
 0x24c   :  { %v1396_v50 = vmul.f32 0.03125, %v519_v49 }
 0x24d   :  { %v540_v51 = vpop.xlane.xlu1 %539 }
 0x24e   :  { %v567_v25 = vmul.f32 %v1396_v50, %v1396_v50  ;;  %v560_v0 = vmul.f32 0.03125, %v540_v51  ;;  %v673_v45 = vsub.f32 %v1361_v16, %v1396_v50 }
 0x250   :  { %v574_v53 = vsub.f32 %v560_v0, %v567_v25 }
 0x252   :  { %v581_v20 = vmax.f32 %v574_v53, 0.0 }
 0x253   :  { %v521_v54 = vpop.xlane.xlu0 %520 }
 0x254   :  { %v588_v57 = vadd.f32 1e-05, %v581_v20  ;;  %v1400_v58 = vmul.f32 0.03125, %v521_v54 }
 0x255   :  { %v542_v61 = vpop.xlane.xlu2 %541 }
 0x256   :  { %1012 = vrsqrt.f32 %v588_v57  ;;  %v568_v62 = vmul.f32 %v1400_v58, %v1400_v58  ;;  %v561_v1 = vmul.f32 0.03125, %v542_v61  ;;  %vm601_vm6 = vweird.f32 %v588_v57 }
 0x257   :  { %v674_v16 = vsub.f32 %v1366_v35, %v1400_v58 }
 0x258   :  { %v575_v56 = vsub.f32 %v561_v1, %v568_v62 }
 0x25a   :  { %v582_v17 = vmax.f32 %v575_v56, 0.0 }
 0x25b   :  { %v523_v44 = vpop.xlane.xlu0 %522 }
 0x25c   :  { %v1013_v2 = vpop.eup %1012  ;;  %v1404_v3 = vmul.f32 0.03125, %v523_v44  ;;  %v589_v5 = vadd.f32 1e-05, %v582_v17 }
 0x25d   :  { %v596_v4 = vmul.f32 %v1013_v2, %v588_v57  ;;  %v544_v6 = vpop.xlane.xlu2 %543  ;;  %vm602_vm5 = vweird.f32 %v1013_v2 }
 0x25e   :  { %v569_v8 = vmul.f32 %v1404_v3, %v1404_v3  ;;  %v562_v9 = vmul.f32 0.03125, %v544_v6  ;;  %1014 = vrsqrt.f32 %v589_v5  ;;  %vm603_vm7 = vmor %vm601_vm6, %vm602_vm5  ;;  %vm611_vm9 = vweird.f32 %v589_v5 }
 0x25f   :  { %v597_v10 = vmul.f32 %v1013_v2, %v596_v4 }
 0x260   :  { %v576_v32 = vsub.f32 %v562_v9, %v569_v8 }
 0x261   :  { %v598_v42 = vmul.f32 0.5, %v597_v10 }
 0x262   :  { %v583_v11 = vmax.f32 %v576_v32, 0.0 }
 0x263   :  { %v599_v29 = vsub.f32 1.5, %v598_v42  ;;  %v525_v23 = vpop.xlane.xlu1 %524 }
 0x264   :  { %v590_v12 = vadd.f32 1e-05, %v583_v11  ;;  %v1408_v22 = vmul.f32 0.03125, %v525_v23  ;;  %v1015_v55 = vpop.eup %1014 }
 0x265   :  { %v600_v13 = vmul.f32 %v1013_v2, %v599_v29  ;;  %v546_v15 = vpop.xlane.xlu0 %545  ;;  %v606_v34 = vmul.f32 %v1015_v55, %v589_v5  ;;  %vm612_vm8 = vweird.f32 %v1015_v55 }
 0x266   :  { %1016 = vrsqrt.f32 %v590_v12  ;;  %v570_v19 = vmul.f32 %v1408_v22, %v1408_v22  ;;  %v563_v59 = vmul.f32 0.03125, %v546_v15  ;;  %vm613_vm10 = vmor %vm611_vm9, %vm612_vm8  ;;  %vm621_vm12 = vweird.f32 %v590_v12 }
 0x267   :  { %v607_v26 = vmul.f32 %v1015_v55, %v606_v34  ;;  %v604_v27 = vsel %vm603_vm7, %v1013_v2, %v600_v13  ;;  %v675_v15 = vsub.f32 %v1371_v21, %v1404_v3 }
 0x268   :  { %v577_v30 = vsub.f32 %v563_v59, %v570_v19  ;;  %v666_v38 = vmul.f32 %v1413_v7, %v604_v27 }
 0x269   :  { %v608_v31 = vmul.f32 0.5, %v607_v26 }
 0x26a   :  { %v584_v36 = vmax.f32 %v577_v30, 0.0  ;;  %v680_v0 = vmul.f32 %v673_v45, %v666_v38 }
 0x26b   :  { %v527_v24 = vpop.xlane.xlu1 %526  ;;  %v609_v41 = vsub.f32 1.5, %v608_v31 }
 0x26c   :  { %v1017_v18 = vpop.eup %1016  ;;  %v1416_v43 = vmul.f32 0.03125, %v527_v24  ;;  %v591_v40 = vadd.f32 1e-05, %v584_v36  ;;  %v688_v63 = vadd.f32 %v1423_v52, %v680_v0 }
 0x26d   :  { %v616_v46 = vmul.f32 %v1017_v18, %v590_v12  ;;  %v548_v47 = vpop.xlane.xlu0 %547  ;;  %v610_v48 = vmul.f32 %v1015_v55, %v609_v41  ;;  %vm622_vm11 = vweird.f32 %v1017_v18 }
 0x26e   :  { %v571_v49 = vmul.f32 %v1416_v43, %v1416_v43  ;;  %v564_v51 = vmul.f32 0.03125, %v548_v47  ;;  %1018 = vrsqrt.f32 %v591_v40  ;;  %vm623_vm13 = vmor %vm621_vm12, %vm622_vm11  ;;  %v709_v5 = vmax.f32 %v688_v63, 0.0 }
 0x26f   :  { %v617_v25 = vmul.f32 %v1017_v18, %v616_v46  ;;  %v614_v20 = vsel %vm613_vm10, %v1015_v55, %v610_v48  ;;  %vm631_vm15 = vweird.f32 %v591_v40 }
 0x270   :  { %v578_v53 = vsub.f32 %v564_v51, %v571_v49  ;;  %v667_v60 = vmul.f32 %v1413_v7, %v614_v20 }
 0x271   :  { %v618_v50 = vmul.f32 0.5, %v617_v25 }
 0x272   :  { %v585_v54 = vmax.f32 %v578_v53, 0.0  ;;  %v681_v62 = vmul.f32 %v674_v16, %v667_v60 }
 0x273   :  { %v619_v57 = vsub.f32 1.5, %v618_v50  ;;  %v529_v61 = vpop.xlane.xlu2 %528 }
 0x274   :  { %v592_v1 = vadd.f32 1e-05, %v585_v54  ;;  %v1429_v56 = vmul.f32 0.03125, %v529_v61  ;;  %v1019_v14 = vpop.eup %1018  ;;  %v689_v2 = vadd.f32 %v1423_v52, %v681_v62 }
 0x275   :  { %v620_v17 = vmul.f32 %v1017_v18, %v619_v57  ;;  %v550_v44 = vpop.xlane.xlu1 %549  ;;  %v626_v35 = vmul.f32 %v1019_v14, %v591_v40  ;;  %vm632_vm14 = vweird.f32 %v1019_v14  ;;  %v677_v57 = vsub.f32 %v1381_v33, %v1416_v43 }
 0x276   :  { %1020 = vrsqrt.f32 %v592_v1  ;;  %v572_v58 = vmul.f32 %v1429_v56, %v1429_v56  ;;  %v565_v4 = vmul.f32 0.03125, %v550_v44  ;;  %v710_v6 = vmax.f32 %v689_v2, 0.0  ;;  %vm633_vm0 = vmor %vm631_vm15, %vm632_vm14 }
 0x277   :  { %v627_v8 = vmul.f32 %v1019_v14, %v626_v35  ;;  %v624_v9 = vsel %vm623_vm13, %v1017_v18, %v620_v17  ;;  %v676_v18 = vsub.f32 %v1376_v28, %v1408_v22  ;;  %vm641_vm2 = vweird.f32 %v592_v1 }
 0x278   :  { %v579_v10 = vsub.f32 %v565_v4, %v572_v58  ;;  %v716_v32 = vpack.c.bf16 %v710_v6, %v709_v5  ;;  %v668_v23 = vmul.f32 %v1413_v7, %v624_v9  ;;  %v678_v17 = vsub.f32 %v1386_v37, %v1429_v56 }
 0x279   :  { %v628_v42 = vmul.f32 0.5, %v627_v8 }
 0x27a   :  { %v586_v11 = vmax.f32 %v579_v10, 0.0  ;;  %796 = vmatmul.bf16.vlgmr.msra.gmra.mxu2 %v716_v32  ;;  %v682_v36 = vmul.f32 %v675_v15, %v668_v23 }
 0x27b   :  { %v531_v29 = vpop.xlane.xlu2 %530  ;;  %v629_v55 = vsub.f32 1.5, %v628_v42 }
 0x27c   :  { %v1021_v12 = vpop.eup %1020  ;;  %v1435_v13 = vmul.f32 0.03125, %v531_v29  ;;  %v593_v19 = vadd.f32 1e-05, %v586_v11  ;;  %v690_v40 = vadd.f32 %v1423_v52, %v682_v36  ;;  %v997_v29 = vld [vmem:[%s1469_s5] ss:$0 sm:$0xff]  ;;  %s827_s5 = sshll.u32 %s1185_s21, 4  ;;  %s828_s5 = int_to_ptr.vmem [resolvable:$true] %s827_s5 }
 0x27d   :  { %v636_v34 = vmul.f32 %v1021_v12, %v592_v1  ;;  %v552_v59 = vpop.xlane.xlu0 %551  ;;  %v630_v26 = vmul.f32 %v1019_v14, %v629_v55  ;;  %vm642_vm1 = vweird.f32 %v1021_v12 }
 0x27e   :  { %v573_v27 = vmul.f32 %v1435_v13, %v1435_v13  ;;  %v566_v30 = vmul.f32 0.03125, %v552_v59  ;;  %1022 = vrsqrt.f32 %v593_v19  ;;  %vm643_vm3 = vmor %vm641_vm2, %vm642_vm1  ;;  %v711_v0 = vmax.f32 %v690_v40, 0.0 }
 0x27f   :  { %v637_v31 = vmul.f32 %v1021_v12, %v636_v34  ;;  %v634_v38 = vsel %vm633_vm0, %v1019_v14, %v630_v26  ;;  %vm651_vm5 = vweird.f32 %v593_v19  ;;  %v679_v37 = vsub.f32 %v1391_v39, %v1435_v13 }
 0x280   :  { %v580_v24 = vsub.f32 %v566_v30, %v573_v27  ;;  %v669_v21 = vmul.f32 %v1413_v7, %v634_v38 }
 0x281   :  { %v638_v41 = vmul.f32 0.5, %v637_v31 }
 0x282   :  { %v587_v3 = vmax.f32 %v580_v24, 0.0  ;;  %v683_v46 = vmul.f32 %v676_v18, %v669_v21 }
 0x283   :  { %v639_v45 = vsub.f32 1.5, %v638_v41 }
 0x284   :  { %v594_v47 = vadd.f32 1e-05, %v587_v3  ;;  %v1023_v48 = vpop.eup %1022  ;;  %v691_v51 = vadd.f32 %v1423_v52, %v683_v46 }
 0x285   :  { %v640_v49 = vmul.f32 %v1021_v12, %v639_v45  ;;  %v646_v25 = vmul.f32 %v1023_v48, %v593_v19  ;;  %vm652_vm4 = vweird.f32 %v1023_v48 }
 0x286   :  { %1024 = vrsqrt.f32 %v594_v47  ;;  %v712_v28 = vmax.f32 %v691_v51, 0.0  ;;  %vm653_vm6 = vmor %vm651_vm5, %vm652_vm4  ;;  %vm661_vm8 = vweird.f32 %v594_v47 }
 0x287   :  { %v647_v22 = vmul.f32 %v1023_v48, %v646_v25  ;;  %v644_v53 = vsel %vm643_vm3, %v1021_v12, %v640_v49 }
 0x288   :  { %v717_v20 = vpack.c.bf16 %v712_v28, %v711_v0  ;;  %v670_v50 = vmul.f32 %v1413_v7, %v644_v53 }
 0x289   :  { %v648_v16 = vmul.f32 0.5, %v647_v22 }
 0x28a   :  { %801 = vmatmul.bf16.gmra.mxu2 %v717_v20  ;;  %v684_v1 = vmul.f32 %v677_v57, %v670_v50 }
 0x28b   :  { %v649_v54 = vsub.f32 1.5, %v648_v16 }
 0x28c   :  { %v1025_v60 = vpop.eup %1024  ;;  %v692_v4 = vadd.f32 %v1423_v52, %v684_v1 }
 0x28d   :  { %v656_v61 = vmul.f32 %v1025_v60, %v594_v47  ;;  %v650_v62 = vmul.f32 %v1023_v48, %v649_v54  ;;  %vm662_vm7 = vweird.f32 %v1025_v60 }
 0x28e   :  { %vm663_vm9 = vmor %vm661_vm8, %vm662_vm7  ;;  %v713_v5 = vmax.f32 %v692_v4, 0.0 }
 0x28f   :  { %v657_v63 = vmul.f32 %v1025_v60, %v656_v61  ;;  %v654_v14 = vsel %vm653_vm6, %v1023_v48, %v650_v62 }
 0x290   :  { %v671_v2 = vmul.f32 %v1413_v7, %v654_v14 }
 0x291   :  { %v658_v44 = vmul.f32 0.5, %v657_v63 }
 0x292   :  { %v685_v58 = vmul.f32 %v678_v17, %v671_v2 }
 0x293   :  { %v659_v35 = vsub.f32 1.5, %v658_v44 }
 0x294   :  { %v693_v33 = vadd.f32 %v1423_v52, %v685_v58 }
 0x295   :  { %v660_v43 = vmul.f32 %v1025_v60, %v659_v35 }
 0x296   :  { %v714_v6 = vmax.f32 %v693_v33, 0.0 }
 0x297   :  { %v664_v8 = vsel %vm663_vm9, %v1025_v60, %v660_v43 }
 0x298   :  { %v718_v9 = vpack.c.bf16 %v714_v6, %v713_v5  ;;  %v672_v10 = vmul.f32 %v1413_v7, %v664_v8 }
 0x29a   :  { %806 = vmatmul.bf16.gmra.mxu2 %v718_v9  ;;  %v686_v56 = vmul.f32 %v679_v37, %v672_v10 }
 0x29c   :  { %v694_v32 = vadd.f32 %v1423_v52, %v686_v56 }
 0x29e   :  { %v715_v42 = vmax.f32 %v694_v32, 0.0 }
 0x2a0   :  { %v719_v11 = vpack.c.bf16 %v715_v42, %v715_v42 }
 0x2aa   :  { %811 = vmatmul.bf16.gmra.mxu2 %v719_v11 }
 0x2fd   :  { %v797_v23 = vpop.f32.mrf.mxu2 }
 0x2fe   :  { %v798_v12 = vadd.f32 %v997_v29, %v797_v23 }
 0x300   :  { %816 = vst [vmem:[#allocation11] sm:$0xff] %v798_v12 }
 0x305   :  { %v799_v55 = vpop.f32.mrf.mxu2 }
 0x306   :  { %v800_v15 = vadd.f32 %v997_v29, %v799_v55 }
 0x308   :  { %817 = vst [vmem:[#allocation11 + $0x8] sm:$0xff] %v800_v15 }
 0x30d   :  { %v802_v7 = vpop.f32.mrf.mxu2 }
 0x30e   :  { %v803_v34 = vadd.f32 %v997_v29, %v802_v7 }
 0x310   :  { %818 = vst [vmem:[#allocation11 + $0x10] sm:$0xff] %v803_v34 }
 0x315   :  { %v804_v39 = vpop.f32.mrf.mxu2 }
 0x316   :  { %v805_v13 = vadd.f32 %v997_v29, %v804_v39 }
 0x318   :  { %819 = vst [vmem:[#allocation11 + $0x18] sm:$0xff] %v805_v13 }
 0x31d   :  { %v807_v52 = vpop.f32.mrf.mxu2 }
 0x31e   :  { %v808_v19 = vadd.f32 %v997_v29, %v807_v52 }
 0x320   :  { %820 = vst [vmem:[#allocation11 + $0x20] sm:$0xff] %v808_v19 }
 0x325   :  { %v809_v59 = vpop.f32.mrf.mxu2 }
 0x326   :  { %v810_v26 = vadd.f32 %v997_v29, %v809_v59 }
 0x328   :  { %821 = vst [vmem:[#allocation11 + $0x28] sm:$0xff] %v810_v26 }
 0x32d   :  { %v812_v27 = vpop.f32.mrf.mxu2 }
 0x32e   :  { %v813_v30 = vadd.f32 %v997_v29, %v812_v27 }
 0x330   :  { %822 = vst [vmem:[#allocation11 + $0x30] sm:$0xff] %v813_v30 }
 0x331   :  { %835 = dma.vmem_to_hbm [thread:$0]  %s828_s5, 896, %s830_s24, [#allocation4], %s1186_s25, %s1186_s25, %s1187_s26  }
 0x335   :  { %v814_v31 = vpop.f32.mrf.mxu2 }
 0x336   :  { %1176 = dma.done.wait [#allocation4], 896  }
 0x337   :  { %1177 = vsyncadd [#allocation4], 4294966400 }
 0x338   :  { %840 = vsyncpa [#allocation3], 1 }
 0x339   :  { %841 = vsyncpa [#allocation6], 1 }
 0x33a   :  { %842 = vsyncpa [#allocation9], 1 }
 0x33b   :  { %843 = vsyncpa [#allocation4], 1 }

</bundles_post_ra>
